<compile_context>
chip_gen: v7x
topology: tpu7x:2x2x1
jax: 0.10.0
libtpu: 0.0.40
codegen_flags: <defaults>
</compile_context>

<pallas_src>
import functools

import jax
import jax.numpy as jnp
from jax.experimental import pallas as pl
from jax.experimental.pallas import tpu as pltpu


def _pick_tile(dim: int, pref: int, align: int) -> int:
    """Largest `align`-aligned tile <= min(pref, dim); the full dim if short.

    Guarantees block dims never exceed the array dim, so only ragged edge
    tiles (dim % tile != 0) are masked by Pallas.
    """
    if dim <= align:
        return dim                       # full (short) dim is always legal
    pref = max(align, (pref // align) * align)
    cap = (dim // align) * align         # largest aligned tile <= dim
    return min(pref, cap)


# ---------------------------------------------------------------------------
# Kernel: per-tile dtype cast with optional 1/255 scaling (memory-bound,
# all HBM traffic pipelined by the BlockSpec grid).
# ---------------------------------------------------------------------------
def _to_tensor_kernel(x_ref, o_ref, *, scale: float):
    x = x_ref[...].astype(jnp.float32)
    if scale != 1.0:                      # static (trace-time) decision
        x = x * jnp.float32(scale)
    o_ref[...] = x.astype(o_ref.dtype)


# ---------------------------------------------------------------------------
# Wrapper: mirrors ToTensor.forward(image, target) -> (tensor, target)
# ---------------------------------------------------------------------------
def to_tensor(image, target=None, *, tile_h=256, tile_w=1024,
              out_dtype=jnp.float32, channels_first=True):
    """JAX/Pallas equivalent of torchvision F.to_tensor on the array path.

    image:  (H, W, 3) uint8 in [0, 255] (or float already in [0, 1])
    returns ((3, H, W) out_dtype in [0, 1], target)   if channels_first
            ((H, W, 3) out_dtype in [0, 1], target)   otherwise (NHWC fast path)
    """
    assert image.ndim == 3 and image.shape[-1] == 3, "expects an (H, W, 3) image"
    H, W, C = image.shape

    # torchvision F.to_tensor only rescales byte (uint8) images.
    scale = 1.0 / 255.0 if image.dtype == jnp.uint8 else 1.0
    kernel = functools.partial(_to_tensor_kernel, scale=scale)

    in_bytes = jnp.dtype(image.dtype).itemsize
    out_bytes = jnp.dtype(out_dtype).itemsize
    cost = pl.CostEstimate(
        flops=C * H * W,
        transcendentals=0,
        bytes_accessed=C * H * W * (in_bytes + out_bytes),
    )

    if channels_first:
        # HWC -> CHW relayout required by the module spec.  Done by XLA on
        # the uint8 side (1 B/px/ch each way); the kernel then streams
        # lane-dense (W-last) tiles.  Use channels_first=False to skip it.
        chw = jnp.transpose(image, (2, 0, 1))            # (3, H, W), uint8
        th = _pick_tile(H, tile_h, 8)
        tw = _pick_tile(W, tile_w, 128)
        grid = (C, pl.cdiv(H, th), pl.cdiv(W, tw))
        out = pl.pallas_call(
            kernel,
            out_shape=jax.ShapeDtypeStruct((C, H, W), out_dtype),
            grid_spec=pltpu.PrefetchScalarGridSpec(
                num_scalar_prefetch=0,
                grid=grid,
                in_specs=[pl.BlockSpec((1, th, tw), lambda c, i, j: (c, i, j))],
                out_specs=pl.BlockSpec((1, th, tw), lambda c, i, j: (c, i, j)),
            ),
            compiler_params=pltpu.CompilerParams(
                dimension_semantics=("parallel", "parallel", "parallel"),
            ),
            cost_estimate=cost,
        )(chw)
        return out, target

    # NHWC fast path: no transpose at all.  The contiguous HWC bytes are
    # viewed as a lane-dense (H, W*3) slab (trailing-dim reshape, no copy).
    flat = image.reshape(H, W * C)
    th = _pick_tile(H, tile_h, 8)
    tw = _pick_tile(W * C, tile_w, 128)
    grid = (pl.cdiv(H, th), pl.cdiv(W * C, tw))
    out = pl.pallas_call(
        kernel,
        out_shape=jax.ShapeDtypeStruct((H, W * C), out_dtype),
        grid_spec=pltpu.PrefetchScalarGridSpec(
            num_scalar_prefetch=0,
            grid=grid,
            in_specs=[pl.BlockSpec((th, tw), lambda i, j: (i, j))],
            out_specs=pl.BlockSpec((th, tw), lambda i, j: (i, j)),
        ),
        compiler_params=pltpu.CompilerParams(
            dimension_semantics=("parallel", "parallel"),
        ),
        cost_estimate=cost,
    )(flat)
    return out.reshape(H, W, C), target

    # TODO(synk): CSV logging, COCO image-name lookup, PIL/accimage handling,
    # wall-clock timing and printing from the original module are host-side
    # side effects with no Pallas equivalent.


if __name__ == "__main__":
    key = jax.random.PRNGKey(0)
    k0, k1 = jax.random.split(key)
    target = {"image_id": jnp.array(7, dtype=jnp.int32)}

    # --- Case 1: small image, ragged W (200 -> one masked edge tile) -------
    H, W = 24, 200
    image = jax.random.randint(k0, (H, W, 3), 0, 256, dtype=jnp.int32).astype(jnp.uint8)
    ref = jnp.transpose(image.astype(jnp.float32) / 255.0, (2, 0, 1))

    out, target_out = to_tensor(image, target)
    out = jax.block_until_ready(out)
    assert out.shape == (3, H, W) and out.dtype == jnp.float32
    assert bool(jnp.all(jnp.isfinite(out)))
    assert bool(jnp.all((out >= 0.0) & (out <= 1.0)))
    assert bool(jnp.allclose(out, ref, atol=1e-6))
    assert target_out is target

    # bf16 fast-path (halves the dominant output HBM bytes).
    out_bf16, _ = to_tensor(image, target, out_dtype=jnp.bfloat16)
    out_bf16 = jax.block_until_ready(out_bf16)
    assert out_bf16.dtype == jnp.bfloat16
    assert bool(jnp.allclose(out_bf16.astype(jnp.float32), ref, atol=5e-3))

    # NHWC fast path (no transpose), same numbers in HWC layout.
    out_hwc, _ = to_tensor(image, target, channels_first=False)
    out_hwc = jax.block_until_ready(out_hwc)
    assert out_hwc.shape == (H, W, 3)
    assert bool(jnp.allclose(out_hwc, image.astype(jnp.float32) / 255.0, atol=1e-6))

    # --- Case 2: typical SSD-ish size, ragged H and W, multi-tile grid -----
    H2, W2 = 300, 300
    image2 = jax.random.randint(k1, (H2, W2, 3), 0, 256, dtype=jnp.int32).astype(jnp.uint8)
    ref2 = jnp.transpose(image2.astype(jnp.float32) / 255.0, (2, 0, 1))
    out2, _ = to_tensor(image2, target)
    out2 = jax.block_until_ready(out2)
    assert out2.shape == (3, H2, W2) and out2.dtype == jnp.float32
    assert bool(jnp.allclose(out2, ref2, atol=1e-6))

    print("KERNEL_OK")
</pallas_src>

<mosaic_0001>
module attributes {stable_mosaic.version = 11 : i64} {
  func.func @_to_tensor_kernel(%arg0: i32, %arg1: i32, %arg2: i32, %arg3: memref<1x24x128xi8, #tpu.memory_space<vmem>>, %arg4: memref<1x24x128xf32, #tpu.memory_space<vmem>>) attributes {dimension_semantics = [#tpu.dimension_semantics<parallel>, #tpu.dimension_semantics<parallel>, #tpu.dimension_semantics<parallel>], iteration_bounds = array<i64: 3, 1, 2>, scalar_prefetch = 0 : i64, scratch_operands = 0 : i64, tpu.core_type = #tpu.core_type<tc>, window_params = [{transform_indices = @transform_0, window_bounds = array<i64: 1, 24, 128>}, {transform_indices = @transform_1, window_bounds = array<i64: 1, 24, 128>}]} {
    %c0 = arith.constant 0 : index
    %c0_0 = arith.constant 0 : index
    %c0_1 = arith.constant 0 : index
    %0 = vector.load %arg3[%c0, %c0_0, %c0_1] : memref<1x24x128xi8, #tpu.memory_space<vmem>>, vector<1x24x128xi8>
    %1 = arith.uitofp %0 : vector<1x24x128xi8> to vector<1x24x128xf32>
    %cst = arith.constant 0.00392156886 : f32
    %2 = vector.broadcast %cst : f32 to vector<1x24x128xf32>
    %3 = arith.mulf %1, %2 : vector<1x24x128xf32>
    %c0_2 = arith.constant 0 : index
    %c0_3 = arith.constant 0 : index
    %c0_4 = arith.constant 0 : index
    %4 = vector.load %arg4[%c0_2, %c0_3, %c0_4] : memref<1x24x128xf32, #tpu.memory_space<vmem>>, vector<1x24x128xf32>
    tpu.vector_store %arg4[%c0_2, %c0_3, %c0_4], %3 {strides = array<i32>} : memref<1x24x128xf32, #tpu.memory_space<vmem>>, vector<1x24x128xf32>,
    return
  }
  func.func @transform_0(%arg0: i32, %arg1: i32, %arg2: i32) -> (i32, i32, i32) {
    %c0_i32 = arith.constant 0 : i32
    return %arg0, %arg1, %arg2 : i32, i32, i32
  }
  func.func @transform_1(%arg0: i32, %arg1: i32, %arg2: i32) -> (i32, i32, i32) {
    %c0_i32 = arith.constant 0 : i32
    return %arg0, %arg1, %arg2 : i32, i32, i32
  }
}

</mosaic_0001>

<bundles_post_ra>
// kernel: tpu_custom_call.1
= control target key start
LH: loop header
LB: loop body
LE: loop exit
PB: predicated region body
PF: predicated region fallthrough
CT: control target
= control target key end

     0   :  { %6 = vsyncpa [#allocation3], 0  ;;  %s745_s0 = inlined_call_operand.hbm [shape: u8[3,24,200], index: 0, kind: input, shape index: {}]   ;;  %s746_s1 = inlined_call_operand.hbm [shape: f32[3,24,200], index: 1, kind: output, shape index: {}]  }
   0x1   :  { %8 = vsyncpa [#allocation3 + $0x1], 0 }
   0x2   :  { %9 = vsyncpa [#allocation4], 0 }
   0x3   :  { %11 = vsyncpa [#allocation4 + $0x1], 0  ;;  %s549_s6 = smov 0   ;;  %s551_s7 = smov 0  }
   0x4   :  { %s553_s8 = smov 0   ;;  %s555_s9 = smov 0  }
   0x5   :  { %s557_s10 = smov 0   ;;  %s559_s11 = smov 0  }
   0x6   :  { %s561_s12 = smov 0   ;;  %s563_s13 = smov 0  }
   0x7 LB: > { %s299_s14 = sadd.s32 4294967295, %s529_s13   ;;  %s300_s15 = sadd.s32 4294967294, %s529_s13   ;;  %s529_s13 = sphi %s563_s13, %s17_s13   ;;  %s525_s12 = sphi %s561_s12, %s761_s12   ;;  %s521_s11 = sphi %s559_s11, %s760_s11   ;;  %s517_s10 = sphi %s557_s10, %s759_s10   ;;  %s513_s9 = sphi %s555_s9, %s758_s9   ;;  %s509_s8 = sphi %s553_s8, %s757_s8   ;;  %s505_s7 = sphi %s551_s7, %s756_s7   ;;  %s501_s6 = sphi %s549_s6, %s755_s6  }
   0x8   : > { %s29_s16 = sadd.s32 1, %s521_s11  ;;  %s36_s17 = sadd.s32 1, %s525_s12 }
   0x9   : > { %p30_p0 = scmp.ge.s32.totalorder %s29_s16, 2  ;;  %s47_s18 = sadd.s32 1, %s509_s8 }
   0xa   : > { %p54_p1 = scmp.ne.s32.totalorder %s509_s8, %s505_s7  ;;  %p55_p2 = scmp.eq.s32.totalorder %s529_s13, 0 }
   0xb   : > { %s763_s16 = smov (%p30_p0, %s29_s16), 0  ;;  %s765_s17 = smov (!%p30_p0, %s36_s17), %s525_s12 }
   0xc   : > { %s43_s19 = ssub.s32 %s521_s11, %s763_s16  ;;  %p602_p3 = por %p55_p2, %p54_p1 }
   0xd   : > { %p38_p4 = scmp.ge.s32.totalorder %s765_s17, 3  ;;  %p60_p5 = scmp.ne.s32.totalorder %s505_s7, %s501_s6 }
   0xe   : > { %p61_p6 = scmp.eq.s32.totalorder %s299_s14, 0  ;;  %p88_p7 = scmp.eq.s32.totalorder %s299_s14, 5 }
   0xf   : > { %s767_s17 = smov (%p38_p4, %s765_s17), 0  ;;  %p94_p10 = scmp.eq.s32.totalorder %s300_s15, 5 }
  0x10   : > { %p610_p8 = por %p61_p6, %p60_p5  ;;  %p614_p9 = por %p88_p7, %p54_p1 }
  0x11   : > { %s40_s23 = ssub.s32 %s525_s12, %s767_s17  ;;  %p620_p12 = por %p94_p10, %p60_p5 }
  0x12   : > { %s750_s22 = scalar_select %p614_p9, 1, 0 }
  0x13   : > { %s44_s24 = sor.u32 %s43_s19, %s40_s23  ;;  %p329_p13 = scmp.lt.s32.totalorder %s529_s13, 6 }
  0x14   : > { %p45_p11 = scmp.eq.s32.totalorder %s44_s24, 0  ;;  %s114_s26 = sand.u32 1, %s509_s8  }
  0x15   : > { %s751_s25 = scalar_select %p620_p12, 1, 0 }
  0x16   : > { %s627_s27 = scalar_select %p45_p11, %s509_s8, %s47_s18  }
  0x17   : > { %s312_s28 = smul.u32 6, %s114_s26  ;;  %p632_p0 = pnand %p329_p13, %p602_p3 }
  0x18   : > { %s313_s29 = smul.u32 6, %s525_s12  ;;  %s644_s19 = scalar_lea.sflag [#allocation3], %s114_s26 }
  0x19   : > { %s118_s3 = scalar_lea.vmem [#allocation2], %s312_s28  ;;  %p403_p2 = pneg %p632_p0 }
  0x1a   : > { %s126_s2 = sadd.s32 %s521_s11, %s313_s29  ;;  %s129_s4 = sshll.u32 %s118_s3, 4  ;;  %s637_s4 = int_to_ptr.vmem [resolvable:$true] %s129_s4 }
  0x1b   : > { %s303_s5 = sshll.u32 %s126_s2, 5  ;;  %s406_s28 = scalar_lea.hbm %s745_s0, 576 }
  0x1c   : > { %s642_s18 = scalar_lea.hbm %s745_s0, %s303_s5 }
  0x1d   : > { %s401_s20 = scalar_lea.hbm %s642_s18, 96  ;;  %p407_p5 = scmp.lt.u32.totalorder %s642_s18, %s745_s0 }
  0x1e   : > { %p402_p1 = scmp.ne.s32.totalorder %s642_s18, %s401_s20  ;;  %p408_p6 = scmp.lt.u32.totalorder %s406_s28, %s401_s20 }
  0x1f   : > { %p410_p10 = scmp.lt.u32.totalorder %s401_s20, %s642_s18 }
  0x20   : > { %p404_p3 = pnand %p403_p2, %p402_p1  ;;  %p409_p7 = por %p408_p6, %p407_p5 }
  0x22   : > { %p405_p4 = pneg %p404_p3  ;;  %p411_p11 = por %p410_p10, %p409_p7 }
  0x24   : > { %p412_p13 = pnand %p411_p11, %p405_p4 }
  0x26   : > { %415 = shalt.err (!%p412_p13)
}
  0x27   : > { %s416_s26 = scalar_lea.vmem %s637_s4, 96  ;;  %s531_s3 = smov [#allocation2]  }
  0x28   : > { %p417_p1 = scmp.ne.s32.totalorder %s637_s4, %s416_s26  ;;  %s421_s5 = sshll.u32 %s531_s3, 4  ;;  %s422_s5 = int_to_ptr.vmem [resolvable:$false] %s421_s5 }
  0x29   : > { %s423_s14 = scalar_lea.vmem %s422_s5, 192  ;;  %p424_p9 = scmp.lt.s32.totalorder %s637_s4, %s422_s5 }
  0x2a   : > { %p419_p3 = pnand %p417_p1, %p403_p2  ;;  %p425_p5 = scmp.lt.s32.totalorder %s423_s14, %s416_s26 }
  0x2c   : > { %p420_p12 = pneg %p419_p3  ;;  %p426_p6 = por %p425_p5, %p424_p9 }
  0x2e   : > { %p427_p7 = pnand %p426_p6, %p420_p12 }
  0x30   : > { %430 = shalt.err (!%p427_p7)
}
  0x31   : > { %s532_s15 = smov 64   ;;  %s533_s20 = smov 32  }
  0x32   : > { %s534_s23 = smov 2   ;;  %p304_p2 = scmp.ge.s32.totalorder %s529_s13, 1 }
  0x33   : > { %324 = dma.hbm_to_vmem [thread:$0]  (!%p632_p0), %s642_s18, 96, %s637_s4, %s644_s19, %s532_s15, %s533_s20, %s534_s23  }
  0x34   : > { %p137_p4 = scmp.lt.s32.totalorder %s529_s13, 7 }
  0x36   : > { %p138_p10 = pnand %p304_p2, %p137_p4 }
  0x37   : > { %s675_s24 = sand.u32 (!%p138_p10), 1, %s505_s7  }
  0x38   : > { %141 = sbr.rel (%p138_p10) target bundleno = 95 (0x5f), region = 24  ;;  %s144_s29 = scalar_lea.sflag (!%p138_p10), [#allocation3], %s675_s24 }
  0x39   : > { %s314_s28 = smul.u32 (!%p138_p10), 6, %s675_s24 }
  0x3b   : > { %s147_s2 = scalar_lea.vmem (!%p138_p10), [#allocation2], %s314_s28 }
  0x3f   : > { %492 = dma.done.wait (%p610_p8), %s144_s29, 96  }
  0x40   : > { %494 = vsyncadd (%p610_p8), %s144_s29, 4294967200  ;;  %s315_s30 = smul.u32 24, %s675_s24  ;;  %v309_v0 = vld [vmem:[%s147_s2] sm:$0xf]   ;;  %v170_v1 = vld [vmem:[%s147_s2 + $0x4] sm:$0x3] }
  0x41   : > { %s316_s4 = smul.u32 6, %s517_s10  ;;  %v310_v2 = vunpack.c.0.s8 %v309_v0  ;;  %v311_v3 = vunpack.c.1.s8 %v309_v0  ;;  %v173_v4 = vunpack.c.0.s8 %v170_v1  ;;  %s187_s5 = scalar_lea.sflag [#allocation4], %s675_s24 }
  0x42   : > { %s165_s19 = scalar_lea.vmem [#allocation5], %s315_s30  ;;  %p753_p9 = scmp.ne.s32.totalorder %s750_s22, 0 }
  0x43   : > { %s201_s18 = sadd.s32 %s513_s9, %s316_s4  ;;  %v174_v5 = vand.u32 255, %v310_v2  ;;  %v175_v6 = vand.u32 255, %v311_v3  ;;  %v176_v7 = vand.u32 255, %v173_v4  ;;  %s204_s26 = sshll.u32 %s165_s19, 4  ;;  %s686_s26 = int_to_ptr.vmem [resolvable:$true] %s204_s26 }
  0x44   : > { %s305_s21 = sshll.u32 %s201_s18, 7  ;;  %s431_s14 = scalar_lea.vmem %s686_s26, 384 }
  0x45   : > { %v177_v8 = vcvt.s32.f32 %v174_v5  ;;  %v178_v9 = vcvt.s32.f32 %v175_v6  ;;  %v179_v10 = vcvt.s32.f32 %v176_v7  ;;  %s691_s3 = scalar_lea.hbm %s746_s1, %s305_s21  ;;  %p432_p8 = scmp.ne.s32.totalorder %s686_s26, %s431_s14 }
  0x46   : > { %s535_s15 = smov [#allocation5]  }
  0x47   : > { %v180_v11 = vmul.f32 0.003921569, %v177_v8  ;;  %v181_v12 = vmul.f32 0.003921569, %v178_v9  ;;  %v182_v13 = vmul.f32 0.003921569, %v179_v10  ;;  %p433_p12 = pnand %p432_p8, %p753_p9 }
  0x48   : > { %s435_s20 = sshll.u32 %s535_s15, 4  ;;  %s436_s20 = int_to_ptr.vmem [resolvable:$false] %s435_s20 }
  0x49   : > { %183 = vst [vmem:[%s165_s19] sm:$0xff] %v180_v11  ;;  %184 = vst [vmem:[%s165_s19 + $0x8] sm:$0xff] %v181_v12  ;;  %p434_p0 = pneg %p433_p12  ;;  %s437_s23 = scalar_lea.vmem %s436_s20, 768 }
  0x4a   : > { %185 = vst [vmem:[%s165_s19 + $0x10] sm:$0xff] %v182_v13  ;;  %p438_p11 = scmp.lt.s32.totalorder %s686_s26, %s436_s20  ;;  %p439_p13 = scmp.lt.s32.totalorder %s437_s23, %s431_s14 }
  0x4c   : > { %p440_p1 = por %p439_p13, %p438_p11 }
  0x4e   : > { %p441_p3 = pnand %p440_p1, %p434_p0 }
  0x50   : > { %444 = shalt.err (!%p441_p3)
}
  0x51   : > { %s445_s28 = scalar_lea.hbm %s691_s3, 384  ;;  %s449_s30 = scalar_lea.hbm %s746_s1, 2304 }
  0x52   : > { %p446_p5 = scmp.ne.s32.totalorder %s691_s3, %s445_s28  ;;  %p450_p2 = scmp.lt.u32.totalorder %s691_s3, %s746_s1 }
  0x53   : > { %p451_p4 = scmp.lt.u32.totalorder %s449_s30, %s445_s28  ;;  %p453_p8 = scmp.lt.u32.totalorder %s445_s28, %s691_s3 }
  0x54   : > { %p447_p6 = pnand %p446_p5, %p753_p9 }
  0x55   : > { %p452_p10 = por %p451_p4, %p450_p2 }
  0x56   : > { %p448_p7 = pneg %p447_p6 }
  0x57   : > { %p454_p12 = por %p453_p8, %p452_p10 }
  0x59   : > { %p455_p0 = pnand %p454_p12, %p448_p7 }
  0x5b   : > { %458 = shalt.err (!%p455_p0)
}
  0x5c   : > { %s536_s19 = smov 128   ;;  %s537_s21 = smov 256  }
  0x5d   : > { %s538_s9 = smov 8  }
  0x5e   : > { %319 = dma.vmem_to_hbm [thread:$0]  (%p753_p9), %s686_s26, 384, %s691_s3, %s187_s5, %s536_s19, %s537_s21, %s538_s9  }
  0x5f PF: > { %p330_p11 = scmp.ge.s32.totalorder %s529_s13, 2  ;;  %s219_s10 = sand.u32 1, %s501_s6  }
  0x60   : > { %p754_p13 = scmp.ne.s32.totalorder %s751_s25, 0  ;;  %s220_s14 = scalar_lea.sflag [#allocation4], %s219_s10 }
  0x62   : > { %p326_p1 = pnand %p330_p11, %p754_p13 }
  0x64   : > { %496 = dma.done.wait (!%p326_p1), %s220_s14, 384  }
  0x65   : > { %498 = vsyncadd (!%p326_p1), %s220_s14, 4294966912  ;;  %s17_s13 = sadd.s32 1, %s529_s13   ;;  %s755_s6 = smov %s505_s7 }
  0x66   : > { %p14_p3 = scmp.ge.s32.totalorder %s17_s13, 8   ;;  %s756_s7 = smov %s509_s8 }
  0x67   : > { %s757_s8 = smov %s627_s27  ;;  %s758_s9 = smov %s521_s11 }
  0x68   : > { %s759_s10 = smov %s525_s12  ;;  %s760_s11 = smov %s763_s16 }
  0x69   : > { %s761_s12 = smov %s767_s17  ;;  %16 = sbr.rel (!%p14_p3) target bundleno = 7 (0x7), region = 69 }
  0x70   :  { %225 = vsyncpa [#allocation3], 1 }
  0x71   :  { %227 = vsyncpa [#allocation3 + $0x1], 1 }
  0x72   :  { %228 = vsyncpa [#allocation4], 1 }
  0x73   :  { %230 = vsyncpa [#allocation4 + $0x1], 1 }

</bundles_post_ra>
